<compile_context>
chip_gen: v7x
topology: tpu7x:2x2x1
jax: 0.10.0
libtpu: 0.0.40
codegen_flags: <defaults>
</compile_context>

<pallas_src>
import functools

import jax
import jax.numpy as jnp
from jax.experimental import pallas as pl
from jax.experimental.pallas import tpu as pltpu

MAX_LANES = 1024          # lane-width cap for the flattened fallback slab
MAX_TILE_ROWS = 512       # row-tile cap (keeps the unrolled in-kernel folds small)
MIN_GRID_BLOCKS = 4       # keep >=4 grid steps: megacore sharding + pipelining


@functools.lru_cache(maxsize=None)
def _budget():
    """(tile_bytes, vmem_limit_bytes), gated per TPU generation."""
    tile_bytes, vmem_limit = 2 * 1024 * 1024, 32 * 1024 * 1024  # safe on v7x (64 MiB phys)
    try:
        if int(pltpu.get_tpu_info().vmem_capacity_bytes) >= 100 * 1024 * 1024:
            # 128 MiB VMEM parts (v5e / v6e): allow bigger tiles / higher limit.
            tile_bytes, vmem_limit = 4 * 1024 * 1024, 64 * 1024 * 1024
    except Exception:
        pass
    return tile_bytes, vmem_limit


def _choose_lane_width(n, sub):
    w = 128
    while w < MAX_LANES and (w * 2) * sub <= n:
        w *= 2
    return w


def _choose_row_tile(rows, w, itemsize, tile_bytes, sub):
    tr = sub
    while True:
        nxt = tr * 2
        if nxt > MAX_TILE_ROWS:
            break
        if nxt * w * itemsize > tile_bytes:
            break
        if nxt >= rows:
            break
        # Don't let the grid collapse below MIN_GRID_BLOCKS once we have it.
        if (pl.cdiv(rows, tr) >= MIN_GRID_BLOCKS
                and pl.cdiv(rows, nxt) < MIN_GRID_BLOCKS):
            break
        tr = nxt
    return tr


# ----------------------------------------------------------------------------
# Kernel 1: observer min/max.  Each grid step reduces its (TR, W) tile to an
# (8, 128) partial using only VPU elementwise folds over vreg-aligned static
# slices (no reshape, no XLU full-reduce); the per-block partials go to a
# "parallel" output and the tiny final reduction happens in plain JAX.
# ----------------------------------------------------------------------------
def _minmax_kernel(x_ref, min_ref, max_ref, *, rows_valid):
    tr, w = x_ref.shape
    x = x_ref[...].astype(jnp.float32)
    if rows_valid is not None:
        # Boundary block of a non-tile-multiple slab: mask out-of-range rows.
        row = pl.program_id(0) * tr + jax.lax.broadcasted_iota(jnp.int32, (tr, w), 0)
        ok = row < rows_valid
        xmin = jnp.where(ok, x, jnp.inf)
        xmax = jnp.where(ok, x, -jnp.inf)
    else:
        xmin = xmax = x
    # Lane-tile fold: (TR, W) -> (TR, 128)  (vreg-aligned 128-wide slices).
    mn = xmin[:, 0:128]
    mx = xmax[:, 0:128]
    for t in range(1, w // 128):
        s = slice(t * 128, (t + 1) * 128)
        mn = jnp.minimum(mn, xmin[:, s])
        mx = jnp.maximum(mx, xmax[:, s])
    # Sublane-group fold: (TR, 128) -> (8, 128)  (8-row aligned slices).
    pmn = mn[0:8, :]
    pmx = mx[0:8, :]
    for g in range(1, tr // 8):
        s = slice(g * 8, (g + 1) * 8)
        pmn = jnp.minimum(pmn, mn[s, :])
        pmx = jnp.maximum(pmx, mx[s, :])
    min_ref[...] = pmn
    max_ref[...] = pmx


def _pallas_minmax(slab, rows, w, tr, vmem_limit):
    nb = pl.cdiv(rows, tr)
    needs_mask = (rows % tr) != 0
    kernel = functools.partial(_minmax_kernel,
                               rows_valid=rows if needs_mask else None)
    pmin, pmax = pl.pallas_call(
        kernel,
        out_shape=(
            jax.ShapeDtypeStruct((nb * 8, 128), jnp.float32),
            jax.ShapeDtypeStruct((nb * 8, 128), jnp.float32),
        ),
        grid_spec=pltpu.PrefetchScalarGridSpec(
            num_scalar_prefetch=0,
            grid=(nb,),
            in_specs=[pl.BlockSpec((tr, w), lambda i: (i, 0))],
            out_specs=(
                pl.BlockSpec((8, 128), lambda i: (i, 0)),
                pl.BlockSpec((8, 128), lambda i: (i, 0)),
            ),
        ),
        compiler_params=pltpu.CompilerParams(
            dimension_semantics=("parallel",),
            vmem_limit_bytes=vmem_limit),
    )(slab)
    return pmin, pmax


# ----------------------------------------------------------------------------
# Kernel 2: elementwise fake quantize / dequantize (pure HBM stream).
# zero_point is folded into the clip bounds; scalars arrive via SMEM prefetch.
# ----------------------------------------------------------------------------
def _fake_quant_kernel(qp_ref, x_ref, o_ref):
    # qp_ref (SMEM): [inv_scale, scale, qmin - zp, qmax - zp]
    x = x_ref[...].astype(jnp.float32)
    q = jnp.clip(jnp.round(x * qp_ref[0]), qp_ref[2], qp_ref[3])
    o_ref[...] = (q * qp_ref[1]).astype(o_ref.dtype)


def _pallas_fake_quant(slab, qparams, rows, w, tr, vmem_limit):
    nb = pl.cdiv(rows, tr)
    return pl.pallas_call(
        _fake_quant_kernel,
        out_shape=jax.ShapeDtypeStruct(slab.shape, slab.dtype),
        grid_spec=pltpu.PrefetchScalarGridSpec(
            num_scalar_prefetch=1,
            grid=(nb,),
            in_specs=[pl.BlockSpec((tr, w), lambda i, qp: (i, 0))],
            out_specs=pl.BlockSpec((tr, w), lambda i, qp: (i, 0)),
        ),
        compiler_params=pltpu.CompilerParams(
            dimension_semantics=("parallel",),
            vmem_limit_bytes=vmem_limit),
    )(qparams, slab)


# ----------------------------------------------------------------------------
# Slab construction (static-shape logic, traced under jit).
# ----------------------------------------------------------------------------
def _build_slab(xc, tile_bytes):
    """Return (slab, tail, rows, w, tr); slab/tail may be None."""
    shape = xc.shape
    n = xc.size
    itemsize = xc.dtype.itemsize
    sub = 8 if itemsize == 4 else 16

    # Layout-preserving collapse: trailing dim already lane-aligned -> no
    # flatten relayout in HBM.
    if (len(shape) >= 2 and shape[-1] % 128 == 0
            and (n // shape[-1]) % sub == 0
            and shape[-1] * sub * itemsize <= tile_bytes):
        w = shape[-1]
        rows = n // w
        slab = xc.reshape(rows, w)
        tr = _choose_row_tile(rows, w, itemsize, tile_bytes, sub)
        return slab, None, rows, w, tr

    # Generic fallback: flatten once, slab = tile-multiple prefix, tiny tail
    # (< w elements) handled in plain JAX (no whole-tensor padding copy).
    flat = xc.reshape(-1)
    w = _choose_lane_width(n, sub)
    rows = n // w
    if rows < sub:
        return None, flat, 0, w, 0       # too small for Pallas; plain JAX path
    rem = n - rows * w
    slab = flat[: rows * w].reshape(rows, w)
    tail = flat[rows * w:] if rem else None
    tr = _choose_row_tile(rows, w, itemsize, tile_bytes, sub)
    return slab, tail, rows, w, tr


def _calculate_qparams(min_val, max_val, quant_min, quant_max):
    # Per-tensor affine: range must include zero (PyTorch observer rule).
    mn = jnp.minimum(min_val.astype(jnp.float32), 0.0)
    mx = jnp.maximum(max_val.astype(jnp.float32), 0.0)
    scale = jnp.maximum((mx - mn) / float(quant_max - quant_min),
                        jnp.finfo(jnp.float32).eps)
    # zero_point kept as f32 but integer-valued (round+clip), like PyTorch's int zp.
    zero_point = jnp.clip(quant_min - jnp.round(mn / scale),
                          quant_min, quant_max)
    return scale, zero_point


# ----------------------------------------------------------------------------
# One jitted step: observer + qparam update + fake quant, state threaded
# explicitly so nothing goes stale under jit.
# ----------------------------------------------------------------------------
@functools.partial(
    jax.jit,
    static_argnames=("quant_min", "quant_max",
                     "observer_enabled", "fake_quant_enabled"))
def _fake_quantize_step(x, min_val, max_val, scale, zero_point, *,
                        quant_min, quant_max,
                        observer_enabled, fake_quant_enabled):
    orig_dtype = x.dtype
    orig_shape = x.shape
    tile_bytes, vmem_limit = _budget()

    # Native f32 / bf16 streaming; anything else upcasts once to f32.
    if x.dtype in (jnp.float32, jnp.bfloat16):
        xc = x
    else:
        xc = x.astype(jnp.float32)

    slab, tail, rows, w, tr = _build_slab(xc, tile_bytes)

    if observer_enabled:
        if slab is not None:
            pmin, pmax = _pallas_minmax(slab, rows, w, tr, vmem_limit)
            mn = jnp.min(pmin)
            mx = jnp.max(pmax)
        else:
            mn = jnp.float32(jnp.inf)
            mx = jnp.float32(-jnp.inf)
        if tail is not None:
            tf = tail.astype(jnp.float32)
            mn = jnp.minimum(mn, jnp.min(tf))
            mx = jnp.maximum(mx, jnp.max(tf))
        min_val = jnp.minimum(min_val, mn)
        max_val = jnp.maximum(max_val, mx)
        scale, zero_point = _calculate_qparams(min_val, max_val,
                                               quant_min, quant_max)

    if not fake_quant_enabled:
        return x, min_val, max_val, scale, zero_point

    scale_f = scale.astype(jnp.float32)
    zp_f = zero_point.astype(jnp.float32)
    inv_scale = 1.0 / scale_f                 # one scalar divide in the wrapper
    lo = quant_min - zp_f                     # zp folded into clip bounds
    hi = quant_max - zp_f

    pieces = []
    if slab is not None:
        qparams = jnp.stack([inv_scale, scale_f, lo, hi]).astype(jnp.float32)
        y_slab = _pallas_fake_quant(slab, qparams, rows, w, tr, vmem_limit)
        pieces.append(y_slab.reshape(-1))
    if tail is not None:
        tq = jnp.clip(jnp.round(tail.astype(jnp.float32) * inv_scale), lo, hi)
        pieces.append((tq * scale_f).astype(xc.dtype))
    y = pieces[0] if len(pieces) == 1 else jnp.concatenate(pieces)
    y = y.reshape(orig_shape).astype(orig_dtype)
    return y, min_val, max_val, scale, zero_point


# ----------------------------------------------------------------------------
# Module equivalent of FakeQuantizeBase (concrete per-tensor-affine behavior).
# ----------------------------------------------------------------------------
class FakeQuantize:
    """JAX/Pallas port of FakeQuantizeBase with per-tensor affine semantics."""

    @classmethod
    def with_args(cls, *args, **kwargs):
        return functools.partial(cls, *args, **kwargs)

    def __init__(self, observer_enabled=True, fake_quant_enabled=True,
                 quant_min=-128, quant_max=127):
        self.observer_enabled = observer_enabled
        self.fake_quant_enabled = fake_quant_enabled
        self.quant_min = quant_min
        self.quant_max = quant_max
        # Deterministic init: identity qparams, empty observer state.
        self.min_val = jnp.float32(jnp.inf)
        self.max_val = jnp.float32(-jnp.inf)
        self.scale = jnp.float32(1.0)
        self.zero_point = jnp.float32(0.0)

    def enable_observer(self):
        self.observer_enabled = True

    def disable_observer(self):
        self.observer_enabled = False

    def enable_fake_quant(self):
        self.fake_quant_enabled = True

    def disable_fake_quant(self):
        self.fake_quant_enabled = False

    def calculate_qparams(self):
        return _calculate_qparams(jnp.asarray(self.min_val),
                                  jnp.asarray(self.max_val),
                                  self.quant_min, self.quant_max)

    def __call__(self, X):
        if X.size == 0:
            return X
        (y, self.min_val, self.max_val,
         self.scale, self.zero_point) = _fake_quantize_step(
            X, self.min_val, self.max_val, self.scale, self.zero_point,
            quant_min=self.quant_min, quant_max=self.quant_max,
            observer_enabled=self.observer_enabled,
            fake_quant_enabled=self.fake_quant_enabled)
        return y


# ----------------------------------------------------------------------------
# Pure-JAX reference for correctness check (same math as the kernels).
# ----------------------------------------------------------------------------
def _ref_fake_quant(x, qmin, qmax):
    xf = x.astype(jnp.float32)
    mn = jnp.minimum(jnp.min(xf), 0.0)
    mx = jnp.maximum(jnp.max(xf), 0.0)
    scale = jnp.maximum((mx - mn) / float(qmax - qmin),
                        jnp.finfo(jnp.float32).eps)
    zp = jnp.clip(qmin - jnp.round(mn / scale), qmin, qmax)
    q = jnp.clip(jnp.round(xf / scale), qmin - zp, qmax - zp)
    return (q * scale).astype(x.dtype)


if __name__ == "__main__":
    key = jax.random.PRNGKey(0)

    # 1) NCHW f32 activation (tile-multiple element count, flatten path).
    x = jax.random.normal(key, (2, 4, 16, 16), dtype=jnp.float32)
    fq = FakeQuantize(observer_enabled=True, fake_quant_enabled=True)
    y = jax.block_until_ready(fq(x))
    assert y.shape == x.shape and y.dtype == x.dtype
    y_ref = _ref_fake_quant(x, fq.quant_min, fq.quant_max)
    assert jnp.allclose(y, y_ref, atol=1e-5, rtol=1e-5), "mismatch vs reference"

    # 2) Tiny ragged tensor: fully handled by the plain-JAX tail path.
    x2 = jax.random.normal(jax.random.PRNGKey(1), (3, 5, 7), dtype=jnp.float32)
    fq2 = FakeQuantize(observer_enabled=True, fake_quant_enabled=True)
    y2 = jax.block_until_ready(fq2(x2))
    y2_ref = _ref_fake_quant(x2, fq2.quant_min, fq2.quant_max)
    assert y2.shape == x2.shape
    assert jnp.allclose(y2, y2_ref, atol=1e-5, rtol=1e-5), "tiny-ragged mismatch"

    # 3) Ragged medium tensor: Pallas prefix slab (masked boundary block) + tail.
    x3 = jax.random.normal(jax.random.PRNGKey(2), (20, 130), dtype=jnp.float32)
    fq3 = FakeQuantize(observer_enabled=True, fake_quant_enabled=True)
    y3 = jax.block_until_ready(fq3(x3))
    y3_ref = _ref_fake_quant(x3, fq3.quant_min, fq3.quant_max)
    assert jnp.allclose(y3, y3_ref, atol=1e-5, rtol=1e-5), "ragged mismatch"

    # 4) bf16 activation: native-dtype, layout-preserving collapse path.
    x4 = jax.random.normal(jax.random.PRNGKey(3), (2, 16, 128),
                           dtype=jnp.bfloat16)
    fq4 = FakeQuantize(observer_enabled=True, fake_quant_enabled=True)
    y4 = jax.block_until_ready(fq4(x4))
    assert y4.dtype == jnp.bfloat16 and y4.shape == x4.shape
    y4_ref = _ref_fake_quant(x4, fq4.quant_min, fq4.quant_max)
    assert jnp.allclose(y4.astype(jnp.float32), y4_ref.astype(jnp.float32),
                        atol=1e-2, rtol=1e-2), "bf16 mismatch"

    # 5) Pass-through when fake quant is disabled.
    fq.disable_fake_quant()
    y_pass = jax.block_until_ready(fq(x))
    assert jnp.array_equal(y_pass, x)

    print("KERNEL_OK")
</pallas_src>

<mosaic_0001>
module attributes {stable_mosaic.version = 11 : i64} {
  func.func @_minmax_kernel(%arg0: i32, %arg1: memref<8x256xf32, #tpu.memory_space<vmem>>, %arg2: memref<8x128xf32, #tpu.memory_space<vmem>>, %arg3: memref<8x128xf32, #tpu.memory_space<vmem>>) attributes {dimension_semantics = [#tpu.dimension_semantics<parallel>], iteration_bounds = array<i64: 1>, scalar_prefetch = 0 : i64, scratch_operands = 0 : i64, tpu.core_type = #tpu.core_type<tc>, window_params = [{transform_indices = @transform_0, window_bounds = array<i64: 8, 256>}, {transform_indices = @transform_1, window_bounds = array<i64: 8, 128>}, {transform_indices = @transform_2, window_bounds = array<i64: 8, 128>}]} {
    %c0 = arith.constant 0 : index
    %c0_0 = arith.constant 0 : index
    %0 = vector.load %arg1[%c0, %c0_0] : memref<8x256xf32, #tpu.memory_space<vmem>>, vector<8x256xf32>
    %1 = vector.extract_strided_slice %0 {offsets = [0, 0], sizes = [8, 128], strides = [1, 1]} : vector<8x256xf32> to vector<8x128xf32>
    %2 = vector.extract_strided_slice %0 {offsets = [0, 0], sizes = [8, 128], strides = [1, 1]} : vector<8x256xf32> to vector<8x128xf32>
    %3 = vector.extract_strided_slice %0 {offsets = [0, 128], sizes = [8, 128], strides = [1, 1]} : vector<8x256xf32> to vector<8x128xf32>
    %4 = arith.minimumf %1, %3 : vector<8x128xf32>
    %5 = vector.extract_strided_slice %0 {offsets = [0, 128], sizes = [8, 128], strides = [1, 1]} : vector<8x256xf32> to vector<8x128xf32>
    %6 = arith.maximumf %2, %5 : vector<8x128xf32>
    %c0_1 = arith.constant 0 : index
    %c0_2 = arith.constant 0 : index
    %7 = vector.load %arg2[%c0_1, %c0_2] : memref<8x128xf32, #tpu.memory_space<vmem>>, vector<8x128xf32>
    tpu.vector_store %arg2[%c0_1, %c0_2], %4 {strides = array<i32>} : memref<8x128xf32, #tpu.memory_space<vmem>>, vector<8x128xf32>,
    %c0_3 = arith.constant 0 : index
    %c0_4 = arith.constant 0 : index
    %8 = vector.load %arg3[%c0_3, %c0_4] : memref<8x128xf32, #tpu.memory_space<vmem>>, vector<8x128xf32>
    tpu.vector_store %arg3[%c0_3, %c0_4], %6 {strides = array<i32>} : memref<8x128xf32, #tpu.memory_space<vmem>>, vector<8x128xf32>,
    return
  }
  func.func @transform_0(%arg0: i32) -> (i32, i32) {
    %c0_i32 = arith.constant 0 : i32
    %c0_i32_0 = arith.constant 0 : i32
    return %arg0, %c0_i32 : i32, i32
  }
  func.func @transform_1(%arg0: i32) -> (i32, i32) {
    %c0_i32 = arith.constant 0 : i32
    %c0_i32_0 = arith.constant 0 : i32
    return %arg0, %c0_i32 : i32, i32
  }
  func.func @transform_2(%arg0: i32) -> (i32, i32) {
    %c0_i32 = arith.constant 0 : i32
    %c0_i32_0 = arith.constant 0 : i32
    return %arg0, %c0_i32 : i32, i32
  }
}

module attributes {stable_mosaic.version = 11 : i64} {
  func.func @_fake_quant_kernel(%arg0: i32, %arg1: memref<4xf32, #tpu.memory_space<smem>>, %arg2: memref<8x256xf32, #tpu.memory_space<vmem>>, %arg3: memref<8x256xf32, #tpu.memory_space<vmem>>) attributes {dimension_semantics = [#tpu.dimension_semantics<parallel>], iteration_bounds = array<i64: 1>, scalar_prefetch = 1 : i64, scratch_operands = 0 : i64, tpu.core_type = #tpu.core_type<tc>, window_params = [{transform_indices = @transform_0, window_bounds = array<i64: 8, 256>}, {transform_indices = @transform_1, window_bounds = array<i64: 8, 256>}]} {
    %c0 = arith.constant 0 : index
    %c0_0 = arith.constant 0 : index
    %0 = vector.load %arg2[%c0, %c0_0] : memref<8x256xf32, #tpu.memory_space<vmem>>, vector<8x256xf32>
    %c0_1 = arith.constant 0 : index
    %1 = memref.load %arg1[%c0_1] : memref<4xf32, #tpu.memory_space<smem>>
    %2 = vector.broadcast %1 : f32 to vector<8x256xf32>
    %3 = arith.mulf %0, %2 : vector<8x256xf32>
    %4 = math.roundeven %3 : vector<8x256xf32>
    %c2 = arith.constant 2 : index
    %5 = memref.load %arg1[%c2] : memref<4xf32, #tpu.memory_space<smem>>
    %c3 = arith.constant 3 : index
    %6 = memref.load %arg1[%c3] : memref<4xf32, #tpu.memory_space<smem>>
    %7 = vector.broadcast %5 : f32 to vector<8x256xf32>
    %8 = arith.maximumf %7, %4 : vector<8x256xf32>
    %9 = vector.broadcast %6 : f32 to vector<8x256xf32>
    %10 = arith.minimumf %9, %8 : vector<8x256xf32>
    %c1 = arith.constant 1 : index
    %11 = memref.load %arg1[%c1] : memref<4xf32, #tpu.memory_space<smem>>
    %12 = vector.broadcast %11 : f32 to vector<8x256xf32>
    %13 = arith.mulf %10, %12 : vector<8x256xf32>
    %c0_2 = arith.constant 0 : index
    %c0_3 = arith.constant 0 : index
    %14 = vector.load %arg3[%c0_2, %c0_3] : memref<8x256xf32, #tpu.memory_space<vmem>>, vector<8x256xf32>
    tpu.vector_store %arg3[%c0_2, %c0_3], %13 {strides = array<i32>} : memref<8x256xf32, #tpu.memory_space<vmem>>, vector<8x256xf32>,
    return
  }
  func.func @transform_0(%arg0: i32, %arg1: memref<4xf32, #tpu.memory_space<smem>>) -> (i32, i32) {
    %c0_i32 = arith.constant 0 : i32
    %c0_i32_0 = arith.constant 0 : i32
    return %arg0, %c0_i32 : i32, i32
  }
  func.func @transform_1(%arg0: i32, %arg1: memref<4xf32, #tpu.memory_space<smem>>) -> (i32, i32) {
    %c0_i32 = arith.constant 0 : i32
    %c0_i32_0 = arith.constant 0 : i32
    return %arg0, %c0_i32 : i32, i32
  }
}

</mosaic_0001>

<bundles_post_ra>
// kernel: _fake_quantize_step.2
= control target key start
LH: loop header
LB: loop body
LE: loop exit
PB: predicated region body
PF: predicated region fallthrough
CT: control target
= control target key end

     0   :  { %s51_s0 = inlined_call_operand.vmem [shape: f32[8,256], index: 0, kind: input, shape index: {}]   ;;  %s52_s1 = inlined_call_operand.vmem [shape: f32[8,128], index: 1, kind: output, shape index: {0}]   ;;  %s53_s2 = inlined_call_operand.vmem [shape: f32[8,128], index: 2, kind: output, shape index: {1}]  }
   0x1   :  { %v10_v0 = vld [vmem:[%s51_s0] sm:$0xff]  ;;  %v11_v1 = vld [vmem:[%s51_s0 + $0x8] sm:$0xff] }
   0x2   :  { %v12_v2 = vmin.f32 %v10_v0, %v11_v1  ;;  %v13_v3 = vmax.f32 %v10_v0, %v11_v1 }
   0x4   :  { %14 = vst [vmem:[%s52_s1] sm:$0xff] %v12_v2  ;;  %15 = vst [vmem:[%s53_s2] sm:$0xff] %v13_v3 }

// kernel: _fake_quantize_step.3
= control target key start
LH: loop header
LB: loop body
LE: loop exit
PB: predicated region body
PF: predicated region fallthrough
CT: control target
= control target key end

     0   :  { %s92_s0 = inlined_call_operand.vmem [shape: f32[4], index: 0, kind: input, shape index: {}]   ;;  %s93_s1 = inlined_call_operand.vmem [shape: f32[8,256], index: 1, kind: input, shape index: {}]   ;;  %s94_s2 = inlined_call_operand.vmem [shape: f32[8,256], index: 2, kind: output, shape index: {}]  }
   0x1   :  { %s7_s11 = sshll.u32 %s92_s0, 4  ;;  %s8_s11 = int_to_ptr.vmem [resolvable:$true] %s7_s11 }
   0x2   :  { %s47_s12 = scalar_lea.vmem %s8_s11, 16  ;;  %p52_p1 = scmp.lt.s32.totalorder %s8_s11, %s8_s11 }
   0x3   :  { %p48_p0 = scmp.ne.s32.totalorder %s8_s11, %s47_s12  ;;  %p53_p2 = scmp.lt.s32.totalorder %s47_s12, %s47_s12 }
   0x5   :  { %p54_p3 = por %p53_p2, %p52_p1 }
   0x7   :  { %p55_p4 = pnand %p54_p3, %p48_p0 }
   0x9   :  { %58 = shalt.err (!%p55_p4)  }
   0xa   :  { %s61_s13 = smov [#allocation3]  }
   0xb   :  { %10 = dma.vmem_to_smem %s8_s11, 16, %s61_s13, [#allocation2] }
   0xc   :  { %59 = dma.done.wait [#allocation2], 16 }
   0xd   :  { %60 = vsyncadd [#allocation2], 4294967280 }
   0xe   :  { %12 = sfence }
   0xf   :  { %s17_s14 = sld [smem:[#allocation3]]  ;;  %s41_s15 = sld [smem:[#allocation3 + $0x2]]  ;;  %v15_v0 = vld [vmem:[%s93_s1] sm:$0xff]  ;;  %v16_v1 = vld [vmem:[%s93_s1 + $0x8] sm:$0xff] }
  0x10   :  { %s42_s16 = sld [smem:[#allocation3 + $0x3]]  ;;  %s43_s0 = sld [smem:[#allocation3 + $0x1]] }
  0x15   :  { %v18_v2 = vstv %s17_s14  ;;  %v25_v5 = vstv %s41_s15 }
  0x16   :  { %v19_v3 = vmul.f32 %v18_v2, %v15_v0  ;;  %v20_v4 = vmul.f32 %v18_v2, %v16_v1  ;;  %v28_v8 = vstv %s42_s16  ;;  %v32_v11 = vstv %s43_s0 }
  0x18   :  { %v44_v6 = vround.rtne.f32 %v19_v3  ;;  %v45_v7 = vround.rtne.f32 %v20_v4 }
  0x1a   :  { %v26_v9 = vmax.f32 %v25_v5, %v44_v6  ;;  %v27_v10 = vmax.f32 %v25_v5, %v45_v7 }
  0x1c   :  { %v29_v12 = vmin.f32 %v28_v8, %v26_v9  ;;  %v30_v13 = vmin.f32 %v28_v8, %v27_v10 }
  0x1e   :  { %v33_v14 = vmul.f32 %v32_v11, %v29_v12  ;;  %v34_v15 = vmul.f32 %v32_v11, %v30_v13 }
  0x20   :  { %35 = vst [vmem:[%s94_s2] sm:$0xff] %v33_v14  ;;  %36 = vst [vmem:[%s94_s2 + $0x8] sm:$0xff] %v34_v15 }

</bundles_post_ra>
